<compile_context>
chip_gen: v5e
topology: v5e:2x2
jax: 0.10.0
libtpu: 0.0.40
codegen_flags: <defaults>
</compile_context>

<pallas_src>
import warnings

import jax
import jax.numpy as jnp
import numpy as np
from jax import lax
from jax.experimental import pallas as pl
from jax.experimental.pallas import tpu as pltpu


def _pow(x, g):
    # exact repeated-multiply for small integer exponents (gamma is usually 2.0)
    if float(g).is_integer() and 0 < int(g) <= 4:
        r = x
        for _ in range(int(g) - 1):
            r = r * x
        return r
    return x ** g


def _make_matcher_kernel(alpha, gamma, w_class, w_bbox):
    def kernel(logits_ref, boxes_ref, onehot_ref, tgt_box_ref, inv_img_ref,
               out_ref, minval_ref, minidx_ref):
        j = pl.program_id(1)
        n_j = pl.num_programs(1)
        tile = logits_ref.shape[2]

        # ---- classification cost: gather BEFORE sigmoid/focal ---------------
        # one-hot gather of the T target-class rows of the raw logits:
        # [T, K] x [K, tile] -> [T, tile]   (exact: one-hot rows select a column)
        onehot = onehot_ref[0].astype(jnp.float32)                   # [T, K]
        z = lax.dot_general(onehot, logits_ref[0].astype(jnp.float32),
                            (((1,), (0,)), ((), ())),
                            preferred_element_type=jnp.float32)      # [T, tile]
        p = jax.nn.sigmoid(z)
        neg = (1.0 - alpha) * _pow(p, gamma) * (-jnp.log(1.0 - p + 1e-8))
        pos = alpha * _pow(1.0 - p, gamma) * (-jnp.log(p + 1e-8))
        cost_class = pos - neg                                       # [T, tile]

        # ---- L1 bbox cost (torch.cdist p=1), reciprocal-multiply normalize --
        out_b = boxes_ref[0].astype(jnp.float32) * inv_img_ref[0]    # [5, tile]
        tgt_b = tgt_box_ref[0].astype(jnp.float32)                   # [T, 5] (pre-normalized)
        tgt_cols = [tgt_b[:, d:d + 1] for d in range(5)]             # hoisted slices
        out_rows = [out_b[d:d + 1, :] for d in range(5)]
        cost_bbox = jnp.abs(tgt_cols[0] - out_rows[0])
        for d in range(1, 5):
            cost_bbox = cost_bbox + jnp.abs(tgt_cols[d] - out_rows[d])

        C = w_bbox * cost_bbox + w_class * cost_class                # [T, tile]
        # TODO(synk): rotated-box IoU cost (iou_rotate_calculate is cv2 polygon
        # clipping) has no clean Pallas equivalent; the cost_giou term is omitted.

        # ---- running argmin over queries (lane reduction, first occurrence) -
        tile_min = jnp.min(C, axis=-1, keepdims=True)                # [T, 1]
        idx = lax.broadcasted_iota(jnp.int32, C.shape, 1)            # [T, tile]
        tile_arg = jnp.min(jnp.where(C == tile_min, idx, tile),
                           axis=-1, keepdims=True) + j * tile        # [T, 1]

        @pl.when(j == 0)
        def _():
            minval_ref[...] = tile_min
            minidx_ref[...] = tile_arg

        @pl.when(j > 0)
        def _():
            better = tile_min < minval_ref[...]   # strict < keeps earliest index
            minval_ref[...] = jnp.where(better, tile_min, minval_ref[...])
            minidx_ref[...] = jnp.where(better, tile_arg, minidx_ref[...])

        @pl.when(j == n_j - 1)
        def _():
            hw_total = n_j * tile
            out_ref[0] = jnp.clip(minidx_ref[...], 0, hw_total - 1)

    return kernel


def min_cost_matcher(pred_logits, pred_boxes, tgt_labels, tgt_boxes_xyxy,
                     image_size_xyxy, image_size_xyxy_tgt,
                     cost_class=1.0, cost_bbox=1.0, cost_giou=0.0,
                     focal_alpha=0.25, focal_gamma=2.0, tile_hw=None):
    """Returns a list of (src_ind, tgt_ind) int32 index pairs, one per batch."""
    bs, K, h, w = pred_logits.shape
    assert pred_boxes.shape == (bs, 5, h, w)
    HW = h * w
    T = tgt_labels.shape[1]
    # note: the PyTorch module handles empty-target images with Python glue;
    # the kernel requires T > 0 (T is baked into block shapes).
    assert T > 0

    if cost_giou != 0.0:
        warnings.warn("MinCostMatcher Pallas kernel: rotated-box IoU (cost_giou) "
                      "term is not implemented and will be ignored.")

    # Native NCHW flatten -> [bs, K, HW] / [bs, 5, HW]; HW stays lane-dense and
    # no XLA transpose pass over the largest input is needed.
    logits = pred_logits.reshape(bs, K, HW).astype(jnp.float32)
    boxes_t = pred_boxes.reshape(bs, 5, HW).astype(jnp.float32)
    onehot = jax.nn.one_hot(tgt_labels, K, dtype=jnp.float32)          # [bs, T, K]
    inv_img = (1.0 / image_size_xyxy.astype(jnp.float32)).reshape(bs, 5, 1)
    tgt_norm = (tgt_boxes_xyxy.astype(jnp.float32)
                / image_size_xyxy_tgt.astype(jnp.float32))             # [bs, T, 5]

    # Lane-dense HW tiling: bounds per-step VMEM (important on v7x's 64 MiB)
    # and gives the pipeline multiple steps to overlap DMA with compute.
    if tile_hw is None:
        tile_hw = HW if HW <= 2048 else 2048
    if HW % tile_hw != 0 or (tile_hw % 128 != 0 and tile_hw != HW):
        tile_hw = HW
    n_tiles = HW // tile_hw

    kernel = _make_matcher_kernel(focal_alpha, focal_gamma, cost_class, cost_bbox)

    grid_spec = pltpu.PrefetchScalarGridSpec(
        num_scalar_prefetch=0,
        grid=(bs, n_tiles),
        in_specs=[
            pl.BlockSpec((1, K, tile_hw), lambda b, j: (b, 0, j)),   # logits  [K, tile]
            pl.BlockSpec((1, 5, tile_hw), lambda b, j: (b, 0, j)),   # boxes   [5, tile]
            pl.BlockSpec((1, T, K), lambda b, j: (b, 0, 0)),         # one-hot [T, K]
            pl.BlockSpec((1, T, 5), lambda b, j: (b, 0, 0)),         # tgt boxes (normalized)
            pl.BlockSpec((1, 5, 1), lambda b, j: (b, 0, 0)),         # 1 / image size
        ],
        out_specs=pl.BlockSpec((1, T, 1), lambda b, j: (b, 0, 0)),
        scratch_shapes=[pltpu.VMEM((T, 1), jnp.float32),             # running min value
                        pltpu.VMEM((T, 1), jnp.int32)],              # running min index
    )

    src = pl.pallas_call(
        kernel,
        out_shape=jax.ShapeDtypeStruct((bs, T, 1), jnp.int32),
        grid_spec=grid_spec,
        compiler_params=pltpu.CompilerParams(
            dimension_semantics=("parallel", "arbitrary"),
            vmem_limit_bytes=32 * 1024 * 1024),
    )(logits, boxes_t, onehot, tgt_norm, inv_img)

    src = src[..., 0]                                                # [bs, T]
    tgt_ind = jnp.arange(T, dtype=jnp.int32)
    return [(src[i], tgt_ind) for i in range(bs)]


def _reference_cost_matrices(pred_logits, pred_boxes, tgt_labels, tgt_boxes,
                             img_size, img_tgt, alpha, gamma, wc, wb):
    """Pure-JAX replica of the module's per-image cost matrix C [HW, T]."""
    bs, K, h, w = pred_logits.shape
    HW = h * w
    p = jax.nn.sigmoid(jnp.transpose(pred_logits, (0, 2, 3, 1)).reshape(bs, HW, K))
    ob = jnp.transpose(pred_boxes, (0, 2, 3, 1)).reshape(bs, HW, 5)
    Cs = []
    for i in range(bs):
        neg = (1 - alpha) * p[i] ** gamma * (-jnp.log(1 - p[i] + 1e-8))
        pos = alpha * (1 - p[i]) ** gamma * (-jnp.log(p[i] + 1e-8))
        cc = (pos - neg)[:, tgt_labels[i]]                           # [HW, T]
        obn = ob[i] / img_size[i][None, :]
        tbn = tgt_boxes[i] / img_tgt[i]
        cb = jnp.sum(jnp.abs(obn[:, None, :] - tbn[None, :, :]), axis=-1)
        Cs.append(wb * cb + wc * cc)
    return Cs


if __name__ == "__main__":
    key = jax.random.PRNGKey(0)
    bs, K, h, w, T = 2, 16, 16, 16, 5
    k1, k2, k3, k4 = jax.random.split(key, 4)

    pred_logits = jax.random.normal(k1, (bs, K, h, w), jnp.float32)
    pred_boxes = jax.random.uniform(k2, (bs, 5, h, w), jnp.float32,
                                    minval=0.0, maxval=128.0)
    tgt_labels = jax.random.randint(k3, (bs, T), 0, K)
    tgt_boxes = jax.random.uniform(k4, (bs, T, 5), jnp.float32,
                                   minval=0.0, maxval=128.0)
    image_size_xyxy = jnp.tile(jnp.array([128.0, 128.0, 128.0, 128.0, 1.0],
                                         jnp.float32)[None, :], (bs, 1))
    image_size_xyxy_tgt = jnp.tile(image_size_xyxy[:, None, :], (1, T, 1))

    # tile_hw=128 -> 2 HW tiles per image, exercising the running-argmin path.
    out = min_cost_matcher(pred_logits, pred_boxes, tgt_labels, tgt_boxes,
                           image_size_xyxy, image_size_xyxy_tgt,
                           cost_class=1.0, cost_bbox=1.0, cost_giou=0.0,
                           focal_alpha=0.25, focal_gamma=2.0, tile_hw=128)
    jax.block_until_ready([p[0] for p in out])

    # correctness check against a pure-JAX reference (tolerant to fp/tie flips)
    Cs = _reference_cost_matrices(pred_logits, pred_boxes, tgt_labels, tgt_boxes,
                                  image_size_xyxy, image_size_xyxy_tgt,
                                  0.25, 2.0, 1.0, 1.0)
    HW = h * w
    for i in range(bs):
        Ci = np.asarray(Cs[i])                                       # [HW, T]
        k_idx = np.asarray(out[i][0])                                # [T]
        assert out[i][0].shape == (T,) and out[i][1].shape == (T,)
        assert np.all((k_idx >= 0) & (k_idx < HW)), k_idx
        ref_min = Ci.min(axis=0)                                     # [T]
        chosen = Ci[k_idx, np.arange(T)]
        assert np.all(chosen <= ref_min + 1e-4 * (np.abs(ref_min) + 1.0)), \
            (chosen, ref_min)

    print("KERNEL_OK")
</pallas_src>

<mosaic_0001>
module attributes {stable_mosaic.version = 11 : i64} {
  func.func @kernel(%arg0: i32, %arg1: i32, %arg2: memref<1x16x128xf32, #tpu.memory_space<vmem>>, %arg3: memref<1x5x128xf32, #tpu.memory_space<vmem>>, %arg4: memref<1x5x16xf32, #tpu.memory_space<vmem>>, %arg5: memref<1x5x5xf32, #tpu.memory_space<vmem>>, %arg6: memref<1x5x1xf32, #tpu.memory_space<vmem>>, %arg7: memref<1x5x1xi32, #tpu.memory_space<vmem>>, %arg8: memref<5x1xf32, #tpu.memory_space<vmem>>, %arg9: memref<5x1xi32, #tpu.memory_space<vmem>>) attributes {dimension_semantics = [#tpu.dimension_semantics<parallel>, #tpu.dimension_semantics<arbitrary>], iteration_bounds = array<i64: 2, 2>, scalar_prefetch = 0 : i64, scratch_operands = 2 : i64, tpu.core_type = #tpu.core_type<tc>, window_params = [{transform_indices = @transform_0, window_bounds = array<i64: 1, 16, 128>}, {transform_indices = @transform_1, window_bounds = array<i64: 1, 5, 128>}, {transform_indices = @transform_2, window_bounds = array<i64: 1, 5, 16>}, {transform_indices = @transform_3, window_bounds = array<i64: 1, 5, 5>}, {transform_indices = @transform_4, window_bounds = array<i64: 1, 5, 1>}, {transform_indices = @transform_5, window_bounds = array<i64: 1, 5, 1>}]} {
    %c0 = arith.constant 0 : index
    %c0_0 = arith.constant 0 : index
    %c0_1 = arith.constant 0 : index
    %0 = vector.load %arg4[%c0, %c0_0, %c0_1] : memref<1x5x16xf32, #tpu.memory_space<vmem>>, vector<1x5x16xf32>
    %1 = vector.shape_cast %0 : vector<1x5x16xf32> to vector<5x16xf32>
    %c0_2 = arith.constant 0 : index
    %c0_3 = arith.constant 0 : index
    %c0_4 = arith.constant 0 : index
    %2 = vector.load %arg2[%c0_2, %c0_3, %c0_4] : memref<1x16x128xf32, #tpu.memory_space<vmem>>, vector<1x16x128xf32>
    %3 = vector.shape_cast %2 : vector<1x16x128xf32> to vector<16x128xf32>
    %cst = arith.constant dense<0.000000e+00> : vector<5x128xf32>
    %4 = tpu.matmul %1, %3, %cst {dimension_numbers = #tpu.dot_dimension_numbers<[1], [0], [0], [1], [0, 0, 1, 1], [], []>} : vector<5x16xf32>, vector<16x128xf32>, vector<5x128xf32> -> vector<5x128xf32>
    %5 = arith.negf %4 : vector<5x128xf32>
    %6 = math.exp %5 : vector<5x128xf32>
    %cst_5 = arith.constant 1.000000e+00 : f32
    %7 = vector.broadcast %cst_5 : f32 to vector<5x128xf32>
    %8 = arith.addf %7, %6 : vector<5x128xf32>
    %9 = arith.divf %7, %8 : vector<5x128xf32>
    %10 = arith.mulf %9, %9 : vector<5x128xf32>
    %cst_6 = arith.constant 7.500000e-01 : f32
    %11 = vector.broadcast %cst_6 : f32 to vector<5x128xf32>
    %12 = arith.mulf %11, %10 : vector<5x128xf32>
    %cst_7 = arith.constant 1.000000e+00 : f32
    %13 = vector.broadcast %cst_7 : f32 to vector<5x128xf32>
    %14 = arith.subf %13, %9 : vector<5x128xf32>
    %cst_8 = arith.constant 9.99999993E-9 : f32
    %15 = vector.broadcast %cst_8 : f32 to vector<5x128xf32>
    %16 = arith.addf %14, %15 : vector<5x128xf32>
    %17 = math.log %16 : vector<5x128xf32>
    %cst_9 = arith.constant 0.000000e+00 : f32
    %18 = vector.broadcast %cst_9 : f32 to vector<5x128xf32>
    %19 = arith.subf %18, %17 : vector<5x128xf32>
    %20 = arith.mulf %12, %19 : vector<5x128xf32>
    %cst_10 = arith.constant 1.000000e+00 : f32
    %21 = vector.broadcast %cst_10 : f32 to vector<5x128xf32>
    %22 = arith.subf %21, %9 : vector<5x128xf32>
    %23 = arith.mulf %22, %22 : vector<5x128xf32>
    %cst_11 = arith.constant 2.500000e-01 : f32
    %24 = vector.broadcast %cst_11 : f32 to vector<5x128xf32>
    %25 = arith.mulf %24, %23 : vector<5x128xf32>
    %cst_12 = arith.constant 9.99999993E-9 : f32
    %26 = vector.broadcast %cst_12 : f32 to vector<5x128xf32>
    %27 = arith.addf %9, %26 : vector<5x128xf32>
    %28 = math.log %27 : vector<5x128xf32>
    %cst_13 = arith.constant 0.000000e+00 : f32
    %29 = vector.broadcast %cst_13 : f32 to vector<5x128xf32>
    %30 = arith.subf %29, %28 : vector<5x128xf32>
    %31 = arith.mulf %25, %30 : vector<5x128xf32>
    %32 = arith.subf %31, %20 : vector<5x128xf32>
    %c0_14 = arith.constant 0 : index
    %c0_15 = arith.constant 0 : index
    %c0_16 = arith.constant 0 : index
    %33 = vector.load %arg3[%c0_14, %c0_15, %c0_16] : memref<1x5x128xf32, #tpu.memory_space<vmem>>, vector<1x5x128xf32>
    %34 = vector.shape_cast %33 : vector<1x5x128xf32> to vector<5x128xf32>
    %c0_17 = arith.constant 0 : index
    %c0_18 = arith.constant 0 : index
    %c0_19 = arith.constant 0 : index
    %35 = vector.load %arg6[%c0_17, %c0_18, %c0_19] : memref<1x5x1xf32, #tpu.memory_space<vmem>>, vector<1x5x1xf32>
    %36 = vector.shape_cast %35 : vector<1x5x1xf32> to vector<5x1xf32>
    %37 = vector.broadcast %36 : vector<5x1xf32> to vector<5x128xf32>
    %38 = arith.mulf %34, %37 : vector<5x128xf32>
    %c0_20 = arith.constant 0 : index
    %c0_21 = arith.constant 0 : index
    %c0_22 = arith.constant 0 : index
    %39 = vector.load %arg5[%c0_20, %c0_21, %c0_22] : memref<1x5x5xf32, #tpu.memory_space<vmem>>, vector<1x5x5xf32>
    %40 = vector.shape_cast %39 : vector<1x5x5xf32> to vector<5x5xf32>
    %41 = vector.extract_strided_slice %40 {offsets = [0, 0], sizes = [5, 1], strides = [1, 1]} : vector<5x5xf32> to vector<5x1xf32>
    %42 = vector.extract_strided_slice %40 {offsets = [0, 1], sizes = [5, 1], strides = [1, 1]} : vector<5x5xf32> to vector<5x1xf32>
    %43 = vector.extract_strided_slice %40 {offsets = [0, 2], sizes = [5, 1], strides = [1, 1]} : vector<5x5xf32> to vector<5x1xf32>
    %44 = vector.extract_strided_slice %40 {offsets = [0, 3], sizes = [5, 1], strides = [1, 1]} : vector<5x5xf32> to vector<5x1xf32>
    %45 = vector.extract_strided_slice %40 {offsets = [0, 4], sizes = [5, 1], strides = [1, 1]} : vector<5x5xf32> to vector<5x1xf32>
    %46 = vector.extract_strided_slice %38 {offsets = [0, 0], sizes = [1, 128], strides = [1, 1]} : vector<5x128xf32> to vector<1x128xf32>
    %47 = vector.extract_strided_slice %38 {offsets = [1, 0], sizes = [1, 128], strides = [1, 1]} : vector<5x128xf32> to vector<1x128xf32>
    %48 = vector.extract_strided_slice %38 {offsets = [2, 0], sizes = [1, 128], strides = [1, 1]} : vector<5x128xf32> to vector<1x128xf32>
    %49 = vector.extract_strided_slice %38 {offsets = [3, 0], sizes = [1, 128], strides = [1, 1]} : vector<5x128xf32> to vector<1x128xf32>
    %50 = vector.extract_strided_slice %38 {offsets = [4, 0], sizes = [1, 128], strides = [1, 1]} : vector<5x128xf32> to vector<1x128xf32>
    %51 = vector.broadcast %41 : vector<5x1xf32> to vector<5x128xf32>
    %52 = vector.broadcast %46 : vector<1x128xf32> to vector<5x128xf32>
    %53 = arith.subf %51, %52 : vector<5x128xf32>
    %54 = math.absf %53 : vector<5x128xf32>
    %55 = vector.broadcast %42 : vector<5x1xf32> to vector<5x128xf32>
    %56 = vector.broadcast %47 : vector<1x128xf32> to vector<5x128xf32>
    %57 = arith.subf %55, %56 : vector<5x128xf32>
    %58 = math.absf %57 : vector<5x128xf32>
    %59 = arith.addf %54, %58 : vector<5x128xf32>
    %60 = vector.broadcast %43 : vector<5x1xf32> to vector<5x128xf32>
    %61 = vector.broadcast %48 : vector<1x128xf32> to vector<5x128xf32>
    %62 = arith.subf %60, %61 : vector<5x128xf32>
    %63 = math.absf %62 : vector<5x128xf32>
    %64 = arith.addf %59, %63 : vector<5x128xf32>
    %65 = vector.broadcast %44 : vector<5x1xf32> to vector<5x128xf32>
    %66 = vector.broadcast %49 : vector<1x128xf32> to vector<5x128xf32>
    %67 = arith.subf %65, %66 : vector<5x128xf32>
    %68 = math.absf %67 : vector<5x128xf32>
    %69 = arith.addf %64, %68 : vector<5x128xf32>
    %70 = vector.broadcast %45 : vector<5x1xf32> to vector<5x128xf32>
    %71 = vector.broadcast %50 : vector<1x128xf32> to vector<5x128xf32>
    %72 = arith.subf %70, %71 : vector<5x128xf32>
    %73 = math.absf %72 : vector<5x128xf32>
    %74 = arith.addf %69, %73 : vector<5x128xf32>
    %cst_23 = arith.constant 1.000000e+00 : f32
    %75 = vector.broadcast %cst_23 : f32 to vector<5x128xf32>
    %76 = arith.mulf %75, %74 : vector<5x128xf32>
    %cst_24 = arith.constant 1.000000e+00 : f32
    %77 = vector.broadcast %cst_24 : f32 to vector<5x128xf32>
    %78 = arith.mulf %77, %32 : vector<5x128xf32>
    %79 = arith.addf %76, %78 : vector<5x128xf32>
    %cst_25 = arith.constant dense<0x7F800000> : vector<5xf32>
    %80 = vector.multi_reduction <minimumf>, %79, %cst_25 [1] : vector<5x128xf32> to vector<5xf32>
    %81 = vector.shape_cast %80 : vector<5xf32> to vector<5x1xf32>
    %82 = tpu.iota {dimensions = array<i32: 1>} : vector<5x128xi32>
    %83 = vector.broadcast %81 : vector<5x1xf32> to vector<5x128xf32>
    %84 = arith.cmpf oeq, %79, %83 : vector<5x128xf32>
    %c128_i32 = arith.constant 128 : i32
    %85 = vector.broadcast %c128_i32 : i32 to vector<5x128xi32>
    %86 = arith.select %84, %82, %85 : vector<5x128xi1>, vector<5x128xi32>
    %cst_26 = arith.constant dense<2147483647> : vector<5xi32>
    %87 = vector.multi_reduction <minsi>, %86, %cst_26 [1] : vector<5x128xi32> to vector<5xi32>
    %88 = vector.shape_cast %87 : vector<5xi32> to vector<5x1xi32>
    %c128_i32_27 = arith.constant 128 : i32
    %89 = arith.muli %arg1, %c128_i32_27 : i32
    %90 = vector.broadcast %89 : i32 to vector<5x1xi32>
    %91 = arith.addi %88, %90 : vector<5x1xi32>
    %c0_i32 = arith.constant 0 : i32
    %92 = arith.cmpi eq, %arg1, %c0_i32 : i32
    %93 = arith.extui %92 : i1 to i32
    %c0_i32_28 = arith.constant 0 : i32
    %94 = arith.cmpi ne, %93, %c0_i32_28 : i32
    scf.if %94 {
      %c0_32 = arith.constant 0 : index
      %c0_33 = arith.constant 0 : index
      %101 = vector.load %arg8[%c0_32, %c0_33] : memref<5x1xf32, #tpu.memory_space<vmem>>, vector<5x1xf32>
      tpu.vector_store %arg8[%c0_32, %c0_33], %81 {strides = array<i32>} : memref<5x1xf32, #tpu.memory_space<vmem>>, vector<5x1xf32>,
      %c0_34 = arith.constant 0 : index
      %c0_35 = arith.constant 0 : index
      %102 = vector.load %arg9[%c0_34, %c0_35] : memref<5x1xi32, #tpu.memory_space<vmem>>, vector<5x1xi32>
      tpu.vector_store %arg9[%c0_34, %c0_35], %91 {strides = array<i32>} : memref<5x1xi32, #tpu.memory_space<vmem>>, vector<5x1xi32>,
    } else {
    }
    %c0_i32_29 = arith.constant 0 : i32
    %95 = arith.cmpi sgt, %arg1, %c0_i32_29 : i32
    %96 = arith.extui %95 : i1 to i32
    %c0_i32_30 = arith.constant 0 : i32
    %97 = arith.cmpi ne, %96, %c0_i32_30 : i32
    scf.if %97 {
      %c0_32 = arith.constant 0 : index
      %c0_33 = arith.constant 0 : index
      %101 = vector.load %arg8[%c0_32, %c0_33] : memref<5x1xf32, #tpu.memory_space<vmem>>, vector<5x1xf32>
      %102 = arith.cmpf olt, %81, %101 : vector<5x1xf32>
      %c0_34 = arith.constant 0 : index
      %c0_35 = arith.constant 0 : index
      %103 = vector.load %arg8[%c0_34, %c0_35] : memref<5x1xf32, #tpu.memory_space<vmem>>, vector<5x1xf32>
      %104 = arith.select %102, %81, %103 : vector<5x1xi1>, vector<5x1xf32>
      %c0_36 = arith.constant 0 : index
      %c0_37 = arith.constant 0 : index
      %105 = vector.load %arg8[%c0_36, %c0_37] : memref<5x1xf32, #tpu.memory_space<vmem>>, vector<5x1xf32>
      tpu.vector_store %arg8[%c0_36, %c0_37], %104 {strides = array<i32>} : memref<5x1xf32, #tpu.memory_space<vmem>>, vector<5x1xf32>,
      %c0_38 = arith.constant 0 : index
      %c0_39 = arith.constant 0 : index
      %106 = vector.load %arg9[%c0_38, %c0_39] : memref<5x1xi32, #tpu.memory_space<vmem>>, vector<5x1xi32>
      %107 = arith.select %102, %91, %106 : vector<5x1xi1>, vector<5x1xi32>
      %c0_40 = arith.constant 0 : index
      %c0_41 = arith.constant 0 : index
      %108 = vector.load %arg9[%c0_40, %c0_41] : memref<5x1xi32, #tpu.memory_space<vmem>>, vector<5x1xi32>
      tpu.vector_store %arg9[%c0_40, %c0_41], %107 {strides = array<i32>} : memref<5x1xi32, #tpu.memory_space<vmem>>, vector<5x1xi32>,
    } else {
    }
    %c1_i32 = arith.constant 1 : i32
    %98 = arith.cmpi eq, %arg1, %c1_i32 : i32
    %99 = arith.extui %98 : i1 to i32
    %c0_i32_31 = arith.constant 0 : i32
    %100 = arith.cmpi ne, %99, %c0_i32_31 : i32
    scf.if %100 {
      %c0_32 = arith.constant 0 : index
      %c0_33 = arith.constant 0 : index
      %101 = vector.load %arg9[%c0_32, %c0_33] : memref<5x1xi32, #tpu.memory_space<vmem>>, vector<5x1xi32>
      %c0_i32_34 = arith.constant 0 : i32
      %c255_i32 = arith.constant 255 : i32
      %102 = vector.broadcast %c0_i32_34 : i32 to vector<5x1xi32>
      %103 = arith.maxsi %102, %101 : vector<5x1xi32>
      %104 = vector.broadcast %c255_i32 : i32 to vector<5x1xi32>
      %105 = arith.minsi %104, %103 : vector<5x1xi32>
      %c0_35 = arith.constant 0 : index
      %c0_36 = arith.constant 0 : index
      %c0_37 = arith.constant 0 : index
      %106 = vector.load %arg7[%c0_35, %c0_36, %c0_37] : memref<1x5x1xi32, #tpu.memory_space<vmem>>, vector<1x5x1xi32>
      %107 = vector.shape_cast %106 : vector<1x5x1xi32> to vector<5x1xi32>
      %108 = vector.shape_cast %105 : vector<5x1xi32> to vector<1x5x1xi32>
      tpu.vector_store %arg7[%c0_35, %c0_36, %c0_37], %108 {strides = array<i32>} : memref<1x5x1xi32, #tpu.memory_space<vmem>>, vector<1x5x1xi32>,
    } else {
    }
    return
  }
  func.func @transform_0(%arg0: i32, %arg1: i32) -> (i32, i32, i32) {
    %c0_i32 = arith.constant 0 : i32
    %c0_i32_0 = arith.constant 0 : i32
    return %arg0, %c0_i32, %arg1 : i32, i32, i32
  }
  func.func @transform_1(%arg0: i32, %arg1: i32) -> (i32, i32, i32) {
    %c0_i32 = arith.constant 0 : i32
    %c0_i32_0 = arith.constant 0 : i32
    return %arg0, %c0_i32, %arg1 : i32, i32, i32
  }
  func.func @transform_2(%arg0: i32, %arg1: i32) -> (i32, i32, i32) {
    %c0_i32 = arith.constant 0 : i32
    %c0_i32_0 = arith.constant 0 : i32
    %c0_i32_1 = arith.constant 0 : i32
    return %arg0, %c0_i32, %c0_i32_0 : i32, i32, i32
  }
  func.func @transform_3(%arg0: i32, %arg1: i32) -> (i32, i32, i32) {
    %c0_i32 = arith.constant 0 : i32
    %c0_i32_0 = arith.constant 0 : i32
    %c0_i32_1 = arith.constant 0 : i32
    return %arg0, %c0_i32, %c0_i32_0 : i32, i32, i32
  }
  func.func @transform_4(%arg0: i32, %arg1: i32) -> (i32, i32, i32) {
    %c0_i32 = arith.constant 0 : i32
    %c0_i32_0 = arith.constant 0 : i32
    %c0_i32_1 = arith.constant 0 : i32
    return %arg0, %c0_i32, %c0_i32_0 : i32, i32, i32
  }
  func.func @transform_5(%arg0: i32, %arg1: i32) -> (i32, i32, i32) {
    %c0_i32 = arith.constant 0 : i32
    %c0_i32_0 = arith.constant 0 : i32
    %c0_i32_1 = arith.constant 0 : i32
    return %arg0, %c0_i32, %c0_i32_0 : i32, i32, i32
  }
}

</mosaic_0001>

<bundles_post_ra>
// kernel: tpu_custom_call.1
= control target key start
LH: loop header
LB: loop body
LE: loop exit
PB: predicated region body
PF: predicated region fallthrough
CT: control target
= control target key end

     0   :  { %s843_s18 = smov 0   ;;  %s845_s19 = smov 0   ;;  %s965_s0 = inlined_call_operand.vmem [shape: f32[2,16,256], index: 0, kind: input, shape index: {}]   ;;  %s966_s1 = inlined_call_operand.vmem [shape: f32[2,5,256], index: 1, kind: input, shape index: {}]   ;;  %s967_s2 = inlined_call_operand.vmem [shape: f32[2,5,16], index: 2, kind: input, shape index: {}]   ;;  %s968_s3 = inlined_call_operand.vmem [shape: f32[2,5,5], index: 3, kind: input, shape index: {}]   ;;  %s969_s4 = inlined_call_operand.vmem [shape: f32[2,5,1], index: 4, kind: input, shape index: {}]   ;;  %s970_s5 = inlined_call_operand.vmem [shape: s32[2,5,1], index: 5, kind: output, shape index: {}]  }
   0x1   :  { %s847_s20 = smov 0   ;;  %s849_s21 = smov 0  }
   0x2   :  { %s851_s22 = smov 0   ;;  %s853_s23 = smov 0  }
   0x3   :  { %s855_s24 = smov 0  }
   0x4 LB: > { %s24_s25 = sadd.s32 1, %s798_s22  ;;  %s27_s26 = sadd.s32 1, %s802_s23  ;;  %s806_s24 = sphi %s855_s24, %s15_s24   ;;  %s802_s23 = sphi %s853_s23, %s976_s23   ;;  %s798_s22 = sphi %s851_s22, %s975_s22   ;;  %s794_s21 = sphi %s849_s21, %s974_s21   ;;  %s790_s20 = sphi %s847_s20, %s973_s20   ;;  %s786_s19 = sphi %s845_s19, %s972_s19   ;;  %s782_s18 = sphi %s843_s18, %s971_s18  }
   0x5   : > { %p25_p0 = scmp.ge.s32.totalorder %s24_s25, 2  ;;  %p43_p1 = scmp.ne.s32.totalorder %s786_s19, %s782_s18 }
   0x6   : > { %p44_p2 = scmp.eq.s32.totalorder %s806_s24, 0  ;;  %s36_s30 = sadd.s32 1, %s786_s19 }
   0x7   : > { %s978_s25 = smov (%p25_p0, %s24_s25), 0  ;;  %s980_s26 = smov (!%p25_p0, %s27_s26), %s802_s23 }
   0x8   : > { %p45_p3 = por %p44_p2, %p43_p1  ;;  %p29_p4 = scmp.ge.s32.totalorder %s980_s26, 2 }
   0x9   : > { %s32_s27 = ssub.s32 %s798_s22, %s978_s25  ;;  %p657_p6 = scmp.ge.s32.totalorder %s806_s24, 4 }
   0xa   : > { %s982_s26 = smov (%p29_p4, %s980_s26), 0 }
   0xb   : > { %s31_s28 = ssub.s32 %s802_s23, %s982_s26  ;;  %201 = sbr.rel (%p657_p6) target bundleno = 24 (0x18), region = 16 }
   0xc   : > { %s33_s29 = sor.u32 %s32_s27, %s31_s28 }
   0xd   : > { %p34_p5 = scmp.eq.s32.totalorder %s33_s29, 0 }
   0xf   : > { %s894_s6 = scalar_select %p34_p5, %s786_s19, %s36_s30  }
  0x10   : > { %204 = sbr.rel (!%p45_p3) target bundleno = 24 (0x18), region = 20  ;;  %s206_s7 = sand.u32 (%p45_p3), 1, %s786_s19  }
  0x11   : > { %s659_s8 = sshll.u32 (%p45_p3), %s802_s23, 2  ;;  %s658_s9 = sshll.u32 (%p45_p3), %s206_s7, 4 }
  0x12   : > { %s210_s10 = sadd.s32 (%p45_p3), %s798_s22, %s659_s8  ;;  %s208_s15 = scalar_lea.vmem (%p45_p3), [#allocation4], %s658_s9 }
  0x13   : > { %s660_s11 = sshll.u32 (%p45_p3), %s210_s10, 3 }
  0x14   : > { %s212_s14 = scalar_lea.vmem (%p45_p3), %s965_s0, %s660_s11 }
  0x15   : > { %v243_v0 = vld [vmem:[%s212_s14] sm:$0xff]  ;;  %v245_v1 = vld [vmem:[%s212_s14 + $0x10] sm:$0xff] }
  0x16   : > { %244 = vst [vmem:[%s208_s15] sm:$0xff] %v243_v0 }
  0x17   : > { %246 = vst [vmem:[%s208_s15 + $0x8] sm:$0xff] %v245_v1 }
  0x18 PF: > { %p661_p7 = scmp.ge.s32.totalorder %s806_s24, 1  ;;  %p283_p8 = scmp.lt.s32.totalorder %s806_s24, 5 }
  0x1a   : > { %p284_p9 = pnand %p661_p7, %p283_p8 }
  0x1b   : > { %s290_s16 = sand.u32 (!%p284_p9), 1, %s782_s18   ;;  %p336_p10 = scmp.lt.s32.totalorder (!%p284_p9), %s794_s21, 1 }
  0x1c   : > { %287 = sbr.rel (%p284_p9) target bundleno = 604 (0x25c), region = 74  ;;  %s662_s17 = sshll.u32 (!%p284_p9), %s290_s16, 4 }
  0x1d   : > { %s292_s27 = scalar_lea.vmem (!%p284_p9), [#allocation4], %s662_s17  ;;  %p338_p11 = scmp.lt.s32.totalorder (!%p284_p9), %s790_s20, 1 }
  0x1e   : > { %p672_p12 = scmp.ne.s32.totalorder (!%p284_p9), %s790_s20, 0 }
  0x21   : > { %v808_v2 = vmov 0   ;;  %v809_v3 = vmov 1   ;;  %v810_v4 = vmov 3   ;;  %v362_v5 = vld [vmem:[%s292_s27 + $0x8] sm:$0xff]  ;;  %v361_v6 = vld [vmem:[%s292_s27] sm:$0xff]  ;;  %s984_s21 = smov (!%p336_p10, %s794_s21), 1 }
  0x22   : > { %738 = vset.pattern.permute.xlu0 %v808_v2  ;;  %739 = vset.pattern.permute.xlu1 %v809_v3  ;;  %s911_s28 = sshll.u32 %s984_s21, 3  ;;  %vm363_vm0 = vcmask 130048   ;;  %v811_v10 = vmov 2   ;;  %v812_v11 = vmov 4   ;;  %s663_s17 = sshll.u32 %s984_s21, 1  ;;  %vm472_vm5 = vcmask 1044480  }
  0x23   : > { %741 = vset.pattern.permute.xlu2 %v810_v4  ;;  %381 = vmatpush.msra.mxu0 %v362_v5  ;;  %s347_s30 = scalar_lea.vmem %s967_s2, %s911_s28  ;;  %s359_s9 = scalar_lea.vmem %s970_s5, %s911_s28 }
  0x24   : > { %v360_v7 = vld [vmem:[%s347_s30] sm:$0x1f]  ;;  %s355_s12 = scalar_lea.vmem %s969_s4, %s911_s28  ;;  %s351_s15 = scalar_lea.vmem %s968_s3, %s911_s28 }
  0x25   : > { %382 = vmatpush.msra.mxu0 %v361_v6  ;;  %v423_v8 = vld [vmem:[%s355_s12] sm:$0x1f]  ;;  %s339_s16 = scalar_select %p338_p11, %s790_s20, 1 }
  0x26   : > { %669 = vmatmul.msk.f32.vlgmr.msra.gmra.mxu0 %vm363_vm0, %v360_v7  ;;  %v430_v9 = vld [vmem:[%s351_s15] sm:$0x1f]  ;;  %426 = vperm.xlu0 %738, %v423_v8   ;;  %v476_v7 = vlaneseq  ;;  %s671_s21 = sshll.u32 %s790_s20, 7 }
  0x27   : > { %440 = vperm.xlu1 %739, %v430_v9   ;;  %456 = vperm.xlu2 %741, %v430_v9   ;;  %s341_s27 = sadd.s32 %s663_s17, %s339_s16 }
  0x28   : > { %s664_s18 = sshll.u32 %s341_s27, 3  ;;  %v477_v8 = vand.u32 127, %v476_v7 }
  0x29   : > { %s343_s7 = scalar_lea.vmem %s966_s1, %s664_s18 }
  0x2a   : > { %v422_v17 = vld [vmem:[%s343_s7] sm:$0x1f] }
  0x2e   : > { %433 = vperm.xlu0 %738, %v430_v9  }
  0x2f   : > { %740 = vset.pattern.permute.xlu1 %v811_v10  ;;  %742 = vset.pattern.permute.xlu2 %v812_v11 }
  0x30   : > { %448 = vperm.xlu1 %740, %v430_v9   ;;  %464 = vperm.xlu2 %742, %v430_v9  }
  0x36   : > { %743 = vset.pattern.permute.xlu0 %v812_v11 }
  0x81   : > { %v457_v29 = vpop.permute.xlu2 %456 }
  0x8a   : > { %v465_v49 = vpop.permute.xlu2 %464 }
  0x98   : > { %v427_v16 = vpop.permute.xlu0 %426 }
  0x99   : > { %v441_v18 = vpop.permute.xlu1 %440  ;;  %v429_v20 = vmul.f32 %v427_v16, %v422_v17 }
  0x9b   : > { %v443_v24 = vperm.slane %v429_v20, 1  ;;  %v436_v25 = vperm.slane %v429_v20, 0  ;;  %v451_v34 = vperm.slane %v429_v20, 2  ;;  %v459_v38 = vperm.slane %v429_v20, 3 }
  0x9c   : > { %v467_v46 = vperm.slane %v429_v20, 4 }
  0x9d   : > { %v444_v32 = vsub.f32 %v441_v18, %v443_v24  ;;  %v460_v45 = vsub.f32 %v457_v29, %v459_v38 }
  0x9e   : > { %v468_v52 = vsub.f32 %v465_v49, %v467_v46 }
  0x9f   : > { %v445_v41 = vand.u32 2147483647, %v444_v32  ;;  %v461_v51 = vand.u32 2147483647, %v460_v45 }
  0xa0   : > { %v434_v27 = vpop.permute.xlu0 %433  ;;  %v469_v60 = vand.u32 2147483647, %v468_v52 }
  0xa1   : > { %v437_v33 = vsub.f32 %v434_v27, %v436_v25 }
  0xa2   : > { %v449_v35 = vpop.permute.xlu1 %448 }
  0xa3   : > { %v384_v12 = vpop.f32.mrf.mxu0  ;;  %v438_v42 = vand.u32 2147483647, %v437_v33  ;;  %v452_v43 = vsub.f32 %v449_v35, %v451_v34 }
  0xa4   : > { %v670_v13 = vmul.f32 -1.442695, %v384_v12 }
  0xa5   : > { %v446_v47 = vadd.f32 %v445_v41, %v438_v42  ;;  %v453_v48 = vand.u32 2147483647, %v452_v43 }
  0xa6   : > { %744 = vpow2.f32 %v670_v13 }
  0xa7   : > { %v454_v53 = vadd.f32 %v453_v48, %v446_v47 }
  0xa9   : > { %v462_v61 = vadd.f32 %v461_v51, %v454_v53 }
  0xab   : > { %v470_v3 = vadd.f32 %v469_v60, %v462_v61 }
  0xac   : > { %v745_v14 = vpop.eup %744 }
  0xad   : > { %v390_v15 = vadd.f32 1.0, %v745_v14 }
  0xaf   : > { %746 = vrcp.f32 %v390_v15  ;;  %v402_v23 = vand.u32 2147483648, %v390_v15  ;;  %v400_v28 = vand.u32 2147483647, %v390_v15  ;;  %vm396_vm2 = vweird.f32 %v390_v15 }
  0xb1   : > { %v403_v31 = vor.u32 1.1754944e-38, %v402_v23  ;;  %vm401_vm4 = vcmp.eq.f32.partialorder %v400_v28, 8.507059e+37 }
  0xb5   : > { %v747_v19 = vpop.eup %746 }
  0xb6   : > { %v392_v21 = vmul.f32 %v747_v19, %v390_v15  ;;  %vm397_vm1 = vweird.f32 %v747_v19 }
  0xb7   : > { %vm398_vm3 = vmor %vm396_vm2, %vm397_vm1 }
  0xb8   : > { %v393_v22 = vsub.f32 1.0, %v392_v21 }
  0xba   : > { %v394_v26 = vmul.f32 %v747_v19, %v393_v22  ;;  %v496_v22 = vstv %s671_s21 }
  0xbc   : > { %v395_v30 = vadd.f32 %v747_v19, %v394_v26 }
  0xbe   : > { %v399_v36 = vsel %vm398_vm3, %v747_v19, %v395_v30 }
  0xbf   : > { %v404_v37 = vsel %vm401_vm4, %v403_v31, %v399_v36 }
  0xc0   : > { %v408_v39 = vsub.f32 1.0, %v404_v37  ;;  %v416_v40 = vadd.f32 1e-08, %v404_v37  ;;  %v406_v54 = vmul.f32 %v404_v37, %v404_v37 }
  0xc2   : > { %v409_v44 = vadd.f32 1e-08, %v408_v39  ;;  %748 = vlog2.f32 %v416_v40  ;;  %v414_v55 = vmul.f32 %v408_v39, %v408_v39  ;;  %v407_v62 = vmul.f32 0.75, %v406_v54 }
  0xc4   : > { %750 = vlog2.f32 %v409_v44  ;;  %v415_v0 = vmul.f32 0.25, %v414_v55 }
  0xc8   : > { %v749_v50 = vpop.eup %748 }
  0xc9   : > { %v418_v56 = vmul.f32 0.6931472, %v749_v50 }
  0xca   : > { %v751_v57 = vpop.eup %750 }
  0xcb   : > { %v411_v58 = vmul.f32 0.6931472, %v751_v57  ;;  %v419_v59 = vsub.f32 0.0, %v418_v56 }
  0xcd   : > { %v412_v63 = vsub.f32 0.0, %v411_v58  ;;  %v420_v2 = vmul.f32 %v419_v59, %v415_v0 }
  0xcf   : > { %v413_v1 = vmul.f32 %v412_v63, %v407_v62 }
  0xd1   : > { %v421_v4 = vsub.f32 %v420_v2, %v413_v1 }
  0xd3   : > { %v471_v5 = vadd.f32 %v470_v3, %v421_v4 }
  0xd5   : > { %v473_v6 = vsel %vm472_vm5, %v471_v5, inf }
  0xd6   : > { %474 = vmin.xlane.f32.xlu0 %v473_v6 }
 0x149   : > { %v475_v9 = vpop.xlane.xlu0 %474 }
 0x14a   : > { %vm478_vm6 = vcmp.eq.f32.partialorder %v471_v5, %v475_v9 }
 0x14b   : > { %v479_v10 = vsel %vm478_vm6, %v477_v8, 128 }
 0x14c   : > { %v480_v11 = vsel %vm472_vm5, %v479_v10, 2147483647 }
 0x14d   : > { %v482_v12 = vshra.s32 %v480_v11, 16  ;;  %v481_v14 = vand.u32 65535, %v480_v11 }
 0x14f   : > { %v484_v13 = vcvt.s32.f32 %v482_v12  ;;  %v483_v16 = vcvt.s32.f32 %v481_v14 }
 0x151   : > { %485 = vmin.xlane.f32.xlu1 %v484_v13 }
 0x1c4   : > { %v486_v15 = vpop.xlane.xlu1 %485 }
 0x1c5   : > { %vm487_vm7 = vcmp.eq.f32.partialorder %v484_v13, %v486_v15  ;;  %v492_v18 = vcvt.f32.s32 %v486_v15 }
 0x1c6   : > { %v488_v17 = vsel %vm487_vm7, %v483_v16, inf }
 0x1c7   : > { %489 = vmin.xlane.f32.xlu2 %v488_v17  ;;  %v493_v20 = vshll.u32 %v492_v18, 16 }
 0x23a   : > { %v490_v19 = vpop.xlane.xlu2 %489 }
 0x23b   : > { %v491_v21 = vcvt.f32.s32 %v490_v19  ;;  %501 = sbr.rel (%p672_p12) target bundleno = 579 (0x243), region = 82 }
 0x23d   : > { %v494_v23 = vadd.s32 %v493_v20, %v491_v21 }
 0x23f   : > { %v497_v24 = vadd.s32 %v496_v22, %v494_v23 }
 0x240   : > { %vm502_vm8 = vcmask 4096  }
 0x241   : > { %503 = vst.msk [vmem:[#allocation2] sm:$0x1f] %vm502_vm8, %v475_v9 }
 0x242   : > { %504 = vst.msk [vmem:[#allocation3] sm:$0x1f] %vm502_vm8, %v497_v24 }
 0x243 PF: > { %p673_p13 = scmp.le.s32.totalorder %s790_s20, 0 }
 0x245   : > { %508 = sbr.rel (%p673_p13) target bundleno = 591 (0x24f), region = 86 }
 0x24a   : > { %v509_v25 = vld [vmem:[#allocation2] sm:$0x1f]  ;;  %vm512_vm9 = vcmask 4096   ;;  %v514_v26 = vld [vmem:[#allocation3] sm:$0x1f] }
 0x24b   : > { %vm510_vm10 = vcmp.lt.f32.partialorder %v475_v9, %v509_v25 }
 0x24c   : > { %v511_v27 = vsel %vm510_vm10, %v475_v9, %v509_v25  ;;  %v515_v28 = vsel %vm510_vm10, %v497_v24, %v514_v26 }
 0x24d   : > { %513 = vst.msk [vmem:[#allocation2] sm:$0x1f] %vm512_vm9, %v511_v27 }
 0x24e   : > { %516 = vst.msk [vmem:[#allocation3] sm:$0x1f] %vm512_vm9, %v515_v28 }
 0x24f PF: > { %p674_p0 = scmp.ne.s32.totalorder %s790_s20, 1 }
 0x251   : > { %520 = sbr.rel (%p674_p0) target bundleno = 604 (0x25c), region = 90 }
 0x256   : > { %v521_v29 = vld [vmem:[#allocation3] sm:$0x1f]  ;;  %vm526_vm12 = vcmask 4096  }
 0x257   : > { %vm522_vm11 = vcmp.gt.s32.totalorder %v521_v29, 0 }
 0x258   : > { %v523_v30 = vsel %vm522_vm11, %v521_v29, 0 }
 0x259   : > { %vm524_vm13 = vcmp.lt.s32.totalorder %v523_v30, 255 }
 0x25a   : > { %v525_v31 = vsel %vm524_vm13, %v523_v30, 255 }
 0x25b   : > { %527 = vst.msk [vmem:[%s359_s9] sm:$0x1f] %vm526_vm12, %v525_v31 }
 0x25c PF: > { %s15_s24 = sadd.s32 1, %s806_s24   ;;  %s971_s18 = smov %s786_s19 }
 0x25d   : > { %p12_p1 = scmp.ge.s32.totalorder %s15_s24, 6   ;;  %s972_s19 = smov %s894_s6 }
 0x25e   : > { %s973_s20 = smov %s798_s22  ;;  %s974_s21 = smov %s802_s23 }
 0x25f   : > { %s975_s22 = smov %s978_s25  ;;  %s976_s23 = smov %s982_s26 }
 0x260   :  { %14 = sbr.rel (!%p12_p1) target bundleno = 4 (0x4), region = 137 }

</bundles_post_ra>
